<compile_context>
chip_gen: v5e
topology: v5e:2x2
jax: 0.10.0
libtpu: 0.0.40
codegen_flags: <defaults>
</compile_context>

<pallas_src>
import functools

import jax
import jax.numpy as jnp
import numpy as np
from jax.experimental import pallas as pl
from jax.experimental.pallas import tpu as pltpu


def _yolo_kernel(anchors_ref, goff_ref, x_ref, o_ref, buf_ref, *, stride, ny, tx):
    """One (batch, anchor, nx-tile) grid step.

    x_ref    : (no, TX*ny)   lane-dense channels-major slab (pure NCHW reshape)
    goff_ref : (2,  TX*ny)   precomputed [y, x] grid offsets for this slab
    o_ref    : (ny, TX, no)  output slab, already in the permuted layout
    buf_ref  : (no, TX*ny)   VMEM scratch holding the computed slab
    """
    a = pl.program_id(1)
    aw = anchors_ref[a, 0]
    ah = anchors_ref[a, 1]

    no = x_ref.shape[0]

    # --- channel math, done once per slab on lane-dense data ---------------
    # rows 0:2 -> (sigmoid + grid offset) * stride
    buf_ref[0:2, :] = (jax.lax.logistic(x_ref[0:2, :]) + goff_ref[...]) * jnp.float32(stride)
    # rows 2:4 -> exp * anchor w/h  (exp only on these two rows)
    buf_ref[2:3, :] = jnp.exp(x_ref[2:3, :]) * aw
    buf_ref[3:4, :] = jnp.exp(x_ref[3:4, :]) * ah
    # rows 4:  -> sigmoid
    if no > 4:
        buf_ref[4:, :] = jax.lax.logistic(x_ref[4:, :])

    # --- fused layout change ------------------------------------------------
    # Column xc = t of this nx-tile occupies lanes [t*ny, (t+1)*ny) of the
    # slab; a small 2-D transpose (XLU) turns its (no, ny) slice into the
    # (ny, no) slice the permuted output layout wants.
    for t in range(tx):
        col = buf_ref[:, t * ny:(t + 1) * ny]          # (no, ny)
        o_ref[:, t, :] = col.T.astype(o_ref.dtype)     # (ny, no)


def _choose_col_tile(nx, ny):
    """Pick the nx-tile width TX for the third grid axis.

    Constraints: TX | nx; TX % 8 == 0 (output sublane rule); TX*ny % 128 == 0
    so the input slab stays lane-dense; TX*ny <= 2048 lanes so each step's
    double-buffered footprint stays small on every generation (incl. v7x's
    64 MiB VMEM).  Falls back to the full map (TX == nx) when no proper
    divisor qualifies (full-extent blocks satisfy the layout rules).
    """
    best = None
    for t in range(8, nx, 8):
        if nx % t == 0 and (t * ny) % 128 == 0 and t * ny <= 2048:
            best = t
    return best if best is not None else nx


def yololayer_forward(x, img_size, anchors, training=False):
    """x: (b, na*no, nx, ny) NCHW; anchors: (na, 2)."""
    b, c, nx, ny = x.shape
    na = anchors.shape[0]
    no = c // na
    stride = img_size // nx          # torch module also uses integer division

    if nx != ny:
        # The torch module's meshgrid broadcast only works for square maps.
        raise ValueError("Yololayer requires a square feature map (nx == ny)")

    if training:
        # training path: view + permute only, exactly like the torch module
        return jnp.transpose(x.reshape(b, na, no, nx, ny), (0, 1, 4, 3, 2))

    if x.dtype != jnp.float32:
        # keep f32 sublane tiling / transcendental precision inside the kernel
        x = x.astype(jnp.float32)
    anchors = anchors.astype(jnp.float32)

    S = nx * ny
    tx = _choose_col_tile(nx, ny)
    k_tiles = nx // tx
    ts = tx * ny

    x_flat = x.reshape(b, na, no, S)     # pure view of NCHW; no pre-transpose

    # Exact integer grid offsets, hoisted out of the kernel:
    #   row 0 -> y  = s % ny   (added to channel 0)
    #   row 1 -> xc = s // ny  (added to channel 1)
    s_idx = jnp.arange(S, dtype=jnp.int32)
    goff = jnp.stack([s_idx % ny, s_idx // ny], axis=0).astype(jnp.float32)

    kernel = functools.partial(_yolo_kernel, stride=float(stride), ny=ny, tx=tx)

    cost = pl.CostEstimate(
        flops=3 * b * na * no * S,
        transcendentals=b * na * no * S,
        bytes_accessed=4 * (2 * b * na * no * S + 2 * S + 2 * na),
    )

    out5 = pl.pallas_call(
        kernel,
        out_shape=jax.ShapeDtypeStruct((b, na, ny, nx, no), jnp.float32),
        grid_spec=pltpu.PrefetchScalarGridSpec(
            num_scalar_prefetch=0,
            grid=(b, na, k_tiles),
            in_specs=[
                pl.BlockSpec(memory_space=pltpu.MemorySpace.SMEM),     # anchors
                pl.BlockSpec((2, ts), lambda i, j, k: (0, k)),         # grid offsets
                pl.BlockSpec((None, None, no, ts),
                             lambda i, j, k: (i, j, 0, k)),            # x slab
            ],
            out_specs=pl.BlockSpec((None, None, ny, tx, no),
                                   lambda i, j, k: (i, j, 0, k, 0)),
            scratch_shapes=[pltpu.VMEM((no, ts), jnp.float32)],
        ),
        compiler_params=pltpu.CompilerParams(
            dimension_semantics=("parallel", "parallel", "parallel")),
        cost_estimate=cost,
    )(anchors, goff, x_flat)

    # (b, na, ny, nx, no) -> (b, na*ny*nx, no) is now a free view.
    return out5.reshape(b, na * ny * nx, no)


def _reference_forward(x, img_size, anchors):
    """Pure-numpy replica of the torch eval-path forward (square maps)."""
    b, c, nx, ny = x.shape
    na = anchors.shape[0]
    no = c // na
    stride = img_size // nx
    xp = np.transpose(x.reshape(b, na, no, nx, ny), (0, 1, 4, 3, 2)).copy()
    sig = 1.0 / (1.0 + np.exp(-xp))
    y_idx = np.arange(ny, dtype=np.float32).reshape(1, 1, ny, 1)
    x_idx = np.arange(nx, dtype=np.float32).reshape(1, 1, 1, nx)
    out = xp.copy()
    out[..., 0] = (sig[..., 0] + y_idx) * stride
    out[..., 1] = (sig[..., 1] + x_idx) * stride
    out[..., 2] = np.exp(xp[..., 2]) * anchors[:, 0].reshape(1, na, 1, 1)
    out[..., 3] = np.exp(xp[..., 3]) * anchors[:, 1].reshape(1, na, 1, 1)
    out[..., 4:] = sig[..., 4:]
    return out.reshape(b, -1, no)


if __name__ == "__main__":
    key = jax.random.PRNGKey(0)

    b, na, no = 2, 3, 8             # no = x, y, w, h, obj, 3 classes
    nx = ny = 16
    img_size = 128                  # stride = 8
    anchors = jnp.asarray([[10.0, 13.0], [16.0, 30.0], [33.0, 23.0]],
                          dtype=jnp.float32)

    x = jax.random.normal(key, (b, na * no, nx, ny), dtype=jnp.float32)

    out = yololayer_forward(x, img_size, anchors, training=False)
    out = jax.block_until_ready(out)

    ref = _reference_forward(np.asarray(x), img_size, np.asarray(anchors))
    assert out.shape == ref.shape, (out.shape, ref.shape)
    np.testing.assert_allclose(np.asarray(out), ref, rtol=1e-5, atol=1e-5)

    print("KERNEL_OK")
</pallas_src>

<mosaic_0001>
module attributes {stable_mosaic.version = 11 : i64} {
  func.func @_yolo_kernel(%arg0: i32, %arg1: i32, %arg2: i32, %arg3: memref<3x2xf32, #tpu.memory_space<smem>>, %arg4: memref<2x128xf32, #tpu.memory_space<vmem>>, %arg5: memref<1x1x8x128xf32, #tpu.memory_space<vmem>>, %arg6: memref<1x1x16x8x8xf32, #tpu.memory_space<vmem>>, %arg7: memref<8x128xf32, #tpu.memory_space<vmem>>) attributes {dimension_semantics = [#tpu.dimension_semantics<parallel>, #tpu.dimension_semantics<parallel>, #tpu.dimension_semantics<parallel>], iteration_bounds = array<i64: 2, 3, 2>, scalar_prefetch = 0 : i64, scratch_operands = 1 : i64, tpu.core_type = #tpu.core_type<tc>, window_params = [{transform_indices = @transform_0, window_bounds = array<i64: 3, 2>}, {transform_indices = @transform_1, window_bounds = array<i64: 2, 128>}, {transform_indices = @transform_2, window_bounds = array<i64: 1, 1, 8, 128>}, {transform_indices = @transform_3, window_bounds = array<i64: 1, 1, 16, 8, 8>}]} {
    %0 = arith.index_cast %arg1 : i32 to index
    %c0 = arith.constant 0 : index
    %1 = memref.load %arg3[%0, %c0] : memref<3x2xf32, #tpu.memory_space<smem>>
    %2 = arith.index_cast %arg1 : i32 to index
    %c1 = arith.constant 1 : index
    %3 = memref.load %arg3[%2, %c1] : memref<3x2xf32, #tpu.memory_space<smem>>
    %c0_0 = arith.constant 0 : index
    %c0_1 = arith.constant 0 : index
    %c0_2 = arith.constant 0 : index
    %c0_3 = arith.constant 0 : index
    %4 = vector.load %arg5[%c0_0, %c0_1, %c0_2, %c0_3] : memref<1x1x8x128xf32, #tpu.memory_space<vmem>>, vector<1x1x2x128xf32>
    %5 = vector.shape_cast %4 : vector<1x1x2x128xf32> to vector<2x128xf32>
    %6 = arith.negf %5 : vector<2x128xf32>
    %7 = math.exp %6 : vector<2x128xf32>
    %cst = arith.constant 1.000000e+00 : f32
    %8 = vector.broadcast %cst : f32 to vector<2x128xf32>
    %9 = arith.addf %8, %7 : vector<2x128xf32>
    %10 = arith.divf %8, %9 : vector<2x128xf32>
    %c0_4 = arith.constant 0 : index
    %c0_5 = arith.constant 0 : index
    %11 = vector.load %arg4[%c0_4, %c0_5] : memref<2x128xf32, #tpu.memory_space<vmem>>, vector<2x128xf32>
    %12 = arith.addf %10, %11 : vector<2x128xf32>
    %cst_6 = arith.constant 8.000000e+00 : f32
    %13 = vector.broadcast %cst_6 : f32 to vector<2x128xf32>
    %14 = arith.mulf %12, %13 : vector<2x128xf32>
    %c0_7 = arith.constant 0 : index
    %c0_8 = arith.constant 0 : index
    %15 = vector.load %arg7[%c0_7, %c0_8] : memref<8x128xf32, #tpu.memory_space<vmem>>, vector<2x128xf32>
    tpu.vector_store %arg7[%c0_7, %c0_8], %14 {strides = array<i32>} : memref<8x128xf32, #tpu.memory_space<vmem>>, vector<2x128xf32>,
    %c0_9 = arith.constant 0 : index
    %c0_10 = arith.constant 0 : index
    %c2 = arith.constant 2 : index
    %c0_11 = arith.constant 0 : index
    %16 = vector.load %arg5[%c0_9, %c0_10, %c2, %c0_11] : memref<1x1x8x128xf32, #tpu.memory_space<vmem>>, vector<1x1x1x128xf32>
    %17 = vector.shape_cast %16 : vector<1x1x1x128xf32> to vector<1x128xf32>
    %18 = math.exp %17 : vector<1x128xf32>
    %19 = vector.broadcast %1 : f32 to vector<1x128xf32>
    %20 = arith.mulf %18, %19 : vector<1x128xf32>
    %c2_12 = arith.constant 2 : index
    %c0_13 = arith.constant 0 : index
    %21 = vector.load %arg7[%c2_12, %c0_13] : memref<8x128xf32, #tpu.memory_space<vmem>>, vector<1x128xf32>
    tpu.vector_store %arg7[%c2_12, %c0_13], %20 {strides = array<i32>} : memref<8x128xf32, #tpu.memory_space<vmem>>, vector<1x128xf32>,
    %c0_14 = arith.constant 0 : index
    %c0_15 = arith.constant 0 : index
    %c3 = arith.constant 3 : index
    %c0_16 = arith.constant 0 : index
    %22 = vector.load %arg5[%c0_14, %c0_15, %c3, %c0_16] : memref<1x1x8x128xf32, #tpu.memory_space<vmem>>, vector<1x1x1x128xf32>
    %23 = vector.shape_cast %22 : vector<1x1x1x128xf32> to vector<1x128xf32>
    %24 = math.exp %23 : vector<1x128xf32>
    %25 = vector.broadcast %3 : f32 to vector<1x128xf32>
    %26 = arith.mulf %24, %25 : vector<1x128xf32>
    %c3_17 = arith.constant 3 : index
    %c0_18 = arith.constant 0 : index
    %27 = vector.load %arg7[%c3_17, %c0_18] : memref<8x128xf32, #tpu.memory_space<vmem>>, vector<1x128xf32>
    tpu.vector_store %arg7[%c3_17, %c0_18], %26 {strides = array<i32>} : memref<8x128xf32, #tpu.memory_space<vmem>>, vector<1x128xf32>,
    %c0_19 = arith.constant 0 : index
    %c0_20 = arith.constant 0 : index
    %c4 = arith.constant 4 : index
    %c0_21 = arith.constant 0 : index
    %28 = vector.load %arg5[%c0_19, %c0_20, %c4, %c0_21] : memref<1x1x8x128xf32, #tpu.memory_space<vmem>>, vector<1x1x4x128xf32>
    %29 = vector.shape_cast %28 : vector<1x1x4x128xf32> to vector<4x128xf32>
    %30 = arith.negf %29 : vector<4x128xf32>
    %31 = math.exp %30 : vector<4x128xf32>
    %cst_22 = arith.constant 1.000000e+00 : f32
    %32 = vector.broadcast %cst_22 : f32 to vector<4x128xf32>
    %33 = arith.addf %32, %31 : vector<4x128xf32>
    %34 = arith.divf %32, %33 : vector<4x128xf32>
    %c4_23 = arith.constant 4 : index
    %c0_24 = arith.constant 0 : index
    %35 = vector.load %arg7[%c4_23, %c0_24] : memref<8x128xf32, #tpu.memory_space<vmem>>, vector<4x128xf32>
    tpu.vector_store %arg7[%c4_23, %c0_24], %34 {strides = array<i32>} : memref<8x128xf32, #tpu.memory_space<vmem>>, vector<4x128xf32>,
    %c0_25 = arith.constant 0 : index
    %c0_26 = arith.constant 0 : index
    %36 = vector.load %arg7[%c0_25, %c0_26] : memref<8x128xf32, #tpu.memory_space<vmem>>, vector<8x16xf32>
    %37 = tpu.transpose %36, [1, 0] : vector<8x16xf32> -> vector<16x8xf32>
    %c0_27 = arith.constant 0 : index
    %c0_28 = arith.constant 0 : index
    %c0_29 = arith.constant 0 : index
    %c0_30 = arith.constant 0 : index
    %c0_31 = arith.constant 0 : index
    %38 = vector.load %arg6[%c0_27, %c0_28, %c0_29, %c0_30, %c0_31] : memref<1x1x16x8x8xf32, #tpu.memory_space<vmem>>, vector<1x1x16x1x8xf32>
    %39 = vector.shape_cast %38 : vector<1x1x16x1x8xf32> to vector<16x8xf32>
    %40 = vector.shape_cast %37 : vector<16x8xf32> to vector<1x1x16x1x8xf32>
    tpu.vector_store %arg6[%c0_27, %c0_28, %c0_29, %c0_30, %c0_31], %40 {strides = array<i32>} : memref<1x1x16x8x8xf32, #tpu.memory_space<vmem>>, vector<1x1x16x1x8xf32>,
    %c0_32 = arith.constant 0 : index
    %c16 = arith.constant 16 : index
    %41 = vector.load %arg7[%c0_32, %c16] : memref<8x128xf32, #tpu.memory_space<vmem>>, vector<8x16xf32>
    %42 = tpu.transpose %41, [1, 0] : vector<8x16xf32> -> vector<16x8xf32>
    %c0_33 = arith.constant 0 : index
    %c0_34 = arith.constant 0 : index
    %c0_35 = arith.constant 0 : index
    %c1_36 = arith.constant 1 : index
    %c0_37 = arith.constant 0 : index
    %43 = vector.load %arg6[%c0_33, %c0_34, %c0_35, %c1_36, %c0_37] : memref<1x1x16x8x8xf32, #tpu.memory_space<vmem>>, vector<1x1x16x1x8xf32>
    %44 = vector.shape_cast %43 : vector<1x1x16x1x8xf32> to vector<16x8xf32>
    %45 = vector.shape_cast %42 : vector<16x8xf32> to vector<1x1x16x1x8xf32>
    tpu.vector_store %arg6[%c0_33, %c0_34, %c0_35, %c1_36, %c0_37], %45 {strides = array<i32>} : memref<1x1x16x8x8xf32, #tpu.memory_space<vmem>>, vector<1x1x16x1x8xf32>,
    %c0_38 = arith.constant 0 : index
    %c32 = arith.constant 32 : index
    %46 = vector.load %arg7[%c0_38, %c32] : memref<8x128xf32, #tpu.memory_space<vmem>>, vector<8x16xf32>
    %47 = tpu.transpose %46, [1, 0] : vector<8x16xf32> -> vector<16x8xf32>
    %c0_39 = arith.constant 0 : index
    %c0_40 = arith.constant 0 : index
    %c0_41 = arith.constant 0 : index
    %c2_42 = arith.constant 2 : index
    %c0_43 = arith.constant 0 : index
    %48 = vector.load %arg6[%c0_39, %c0_40, %c0_41, %c2_42, %c0_43] : memref<1x1x16x8x8xf32, #tpu.memory_space<vmem>>, vector<1x1x16x1x8xf32>
    %49 = vector.shape_cast %48 : vector<1x1x16x1x8xf32> to vector<16x8xf32>
    %50 = vector.shape_cast %47 : vector<16x8xf32> to vector<1x1x16x1x8xf32>
    tpu.vector_store %arg6[%c0_39, %c0_40, %c0_41, %c2_42, %c0_43], %50 {strides = array<i32>} : memref<1x1x16x8x8xf32, #tpu.memory_space<vmem>>, vector<1x1x16x1x8xf32>,
    %c0_44 = arith.constant 0 : index
    %c48 = arith.constant 48 : index
    %51 = vector.load %arg7[%c0_44, %c48] : memref<8x128xf32, #tpu.memory_space<vmem>>, vector<8x16xf32>
    %52 = tpu.transpose %51, [1, 0] : vector<8x16xf32> -> vector<16x8xf32>
    %c0_45 = arith.constant 0 : index
    %c0_46 = arith.constant 0 : index
    %c0_47 = arith.constant 0 : index
    %c3_48 = arith.constant 3 : index
    %c0_49 = arith.constant 0 : index
    %53 = vector.load %arg6[%c0_45, %c0_46, %c0_47, %c3_48, %c0_49] : memref<1x1x16x8x8xf32, #tpu.memory_space<vmem>>, vector<1x1x16x1x8xf32>
    %54 = vector.shape_cast %53 : vector<1x1x16x1x8xf32> to vector<16x8xf32>
    %55 = vector.shape_cast %52 : vector<16x8xf32> to vector<1x1x16x1x8xf32>
    tpu.vector_store %arg6[%c0_45, %c0_46, %c0_47, %c3_48, %c0_49], %55 {strides = array<i32>} : memref<1x1x16x8x8xf32, #tpu.memory_space<vmem>>, vector<1x1x16x1x8xf32>,
    %c0_50 = arith.constant 0 : index
    %c64 = arith.constant 64 : index
    %56 = vector.load %arg7[%c0_50, %c64] : memref<8x128xf32, #tpu.memory_space<vmem>>, vector<8x16xf32>
    %57 = tpu.transpose %56, [1, 0] : vector<8x16xf32> -> vector<16x8xf32>
    %c0_51 = arith.constant 0 : index
    %c0_52 = arith.constant 0 : index
    %c0_53 = arith.constant 0 : index
    %c4_54 = arith.constant 4 : index
    %c0_55 = arith.constant 0 : index
    %58 = vector.load %arg6[%c0_51, %c0_52, %c0_53, %c4_54, %c0_55] : memref<1x1x16x8x8xf32, #tpu.memory_space<vmem>>, vector<1x1x16x1x8xf32>
    %59 = vector.shape_cast %58 : vector<1x1x16x1x8xf32> to vector<16x8xf32>
    %60 = vector.shape_cast %57 : vector<16x8xf32> to vector<1x1x16x1x8xf32>
    tpu.vector_store %arg6[%c0_51, %c0_52, %c0_53, %c4_54, %c0_55], %60 {strides = array<i32>} : memref<1x1x16x8x8xf32, #tpu.memory_space<vmem>>, vector<1x1x16x1x8xf32>,
    %c0_56 = arith.constant 0 : index
    %c80 = arith.constant 80 : index
    %61 = vector.load %arg7[%c0_56, %c80] : memref<8x128xf32, #tpu.memory_space<vmem>>, vector<8x16xf32>
    %62 = tpu.transpose %61, [1, 0] : vector<8x16xf32> -> vector<16x8xf32>
    %c0_57 = arith.constant 0 : index
    %c0_58 = arith.constant 0 : index
    %c0_59 = arith.constant 0 : index
    %c5 = arith.constant 5 : index
    %c0_60 = arith.constant 0 : index
    %63 = vector.load %arg6[%c0_57, %c0_58, %c0_59, %c5, %c0_60] : memref<1x1x16x8x8xf32, #tpu.memory_space<vmem>>, vector<1x1x16x1x8xf32>
    %64 = vector.shape_cast %63 : vector<1x1x16x1x8xf32> to vector<16x8xf32>
    %65 = vector.shape_cast %62 : vector<16x8xf32> to vector<1x1x16x1x8xf32>
    tpu.vector_store %arg6[%c0_57, %c0_58, %c0_59, %c5, %c0_60], %65 {strides = array<i32>} : memref<1x1x16x8x8xf32, #tpu.memory_space<vmem>>, vector<1x1x16x1x8xf32>,
    %c0_61 = arith.constant 0 : index
    %c96 = arith.constant 96 : index
    %66 = vector.load %arg7[%c0_61, %c96] : memref<8x128xf32, #tpu.memory_space<vmem>>, vector<8x16xf32>
    %67 = tpu.transpose %66, [1, 0] : vector<8x16xf32> -> vector<16x8xf32>
    %c0_62 = arith.constant 0 : index
    %c0_63 = arith.constant 0 : index
    %c0_64 = arith.constant 0 : index
    %c6 = arith.constant 6 : index
    %c0_65 = arith.constant 0 : index
    %68 = vector.load %arg6[%c0_62, %c0_63, %c0_64, %c6, %c0_65] : memref<1x1x16x8x8xf32, #tpu.memory_space<vmem>>, vector<1x1x16x1x8xf32>
    %69 = vector.shape_cast %68 : vector<1x1x16x1x8xf32> to vector<16x8xf32>
    %70 = vector.shape_cast %67 : vector<16x8xf32> to vector<1x1x16x1x8xf32>
    tpu.vector_store %arg6[%c0_62, %c0_63, %c0_64, %c6, %c0_65], %70 {strides = array<i32>} : memref<1x1x16x8x8xf32, #tpu.memory_space<vmem>>, vector<1x1x16x1x8xf32>,
    %c0_66 = arith.constant 0 : index
    %c112 = arith.constant 112 : index
    %71 = vector.load %arg7[%c0_66, %c112] : memref<8x128xf32, #tpu.memory_space<vmem>>, vector<8x16xf32>
    %72 = tpu.transpose %71, [1, 0] : vector<8x16xf32> -> vector<16x8xf32>
    %c0_67 = arith.constant 0 : index
    %c0_68 = arith.constant 0 : index
    %c0_69 = arith.constant 0 : index
    %c7 = arith.constant 7 : index
    %c0_70 = arith.constant 0 : index
    %73 = vector.load %arg6[%c0_67, %c0_68, %c0_69, %c7, %c0_70] : memref<1x1x16x8x8xf32, #tpu.memory_space<vmem>>, vector<1x1x16x1x8xf32>
    %74 = vector.shape_cast %73 : vector<1x1x16x1x8xf32> to vector<16x8xf32>
    %75 = vector.shape_cast %72 : vector<16x8xf32> to vector<1x1x16x1x8xf32>
    tpu.vector_store %arg6[%c0_67, %c0_68, %c0_69, %c7, %c0_70], %75 {strides = array<i32>} : memref<1x1x16x8x8xf32, #tpu.memory_space<vmem>>, vector<1x1x16x1x8xf32>,
    return
  }
  func.func @transform_0(%arg0: i32, %arg1: i32, %arg2: i32) -> (i32, i32) {
    %c0_i32 = arith.constant 0 : i32
    %c0_i32_0 = arith.constant 0 : i32
    %c0_i32_1 = arith.constant 0 : i32
    return %c0_i32, %c0_i32_0 : i32, i32
  }
  func.func @transform_1(%arg0: i32, %arg1: i32, %arg2: i32) -> (i32, i32) {
    %c0_i32 = arith.constant 0 : i32
    %c0_i32_0 = arith.constant 0 : i32
    return %c0_i32, %arg2 : i32, i32
  }
  func.func @transform_2(%arg0: i32, %arg1: i32, %arg2: i32) -> (i32, i32, i32, i32) {
    %c0_i32 = arith.constant 0 : i32
    %c0_i32_0 = arith.constant 0 : i32
    return %arg0, %arg1, %c0_i32, %arg2 : i32, i32, i32, i32
  }
  func.func @transform_3(%arg0: i32, %arg1: i32, %arg2: i32) -> (i32, i32, i32, i32, i32) {
    %c0_i32 = arith.constant 0 : i32
    %c0_i32_0 = arith.constant 0 : i32
    %c0_i32_1 = arith.constant 0 : i32
    return %arg0, %arg1, %c0_i32, %arg2, %c0_i32_0 : i32, i32, i32, i32, i32
  }
}

</mosaic_0001>

<bundles_post_ra>
// kernel: tpu_custom_call.1
= control target key start
LH: loop header
LB: loop body
LE: loop exit
PB: predicated region body
PF: predicated region fallthrough
CT: control target
= control target key end

     0   :  { %s1956_s0 = inlined_call_operand.vmem [shape: f32[3,2], index: 0, kind: input, shape index: {}]   ;;  %s1957_s1 = inlined_call_operand.vmem [shape: f32[2,256], index: 1, kind: input, shape index: {}]   ;;  %s1958_s2 = inlined_call_operand.hbm [shape: f32[2,3,8,256], index: 2, kind: input, shape index: {}]   ;;  %s1959_s3 = inlined_call_operand.vmem [shape: f32[2,3,16,16,8], index: 3, kind: output, shape index: {}]  }
   0x1   :  { %1965 = sst [smem:[#allocation17_spill]] %s1956_s0 }
   0x2   :  { %1966 = sst [smem:[#allocation18_spill]] %s1957_s1 }
   0x3   :  { %1967 = sst [smem:[#allocation19_spill]] %s1959_s3 }
   0x4   :  { %8 = vsyncpa [#allocation5], 0 }
   0x5   :  { %9 = vsyncpa [#allocation4], 0 }
   0x6   :  { %11 = vsyncpa [#allocation4 + $0x1], 0  ;;  %s1487_s12 = smov 0   ;;  %s1489_s13 = smov 0  }
   0x7   :  { %s1491_s14 = smov 0   ;;  %s1493_s15 = smov 0  }
   0x8   :  { %s1495_s16 = smov 0   ;;  %s1497_s17 = smov 0  }
   0x9   :  { %s1499_s18 = smov 0   ;;  %s1501_s19 = smov 0  }
   0xa   :  { %s1503_s20 = smov 0   ;;  %s1505_s21 = smov 0  }
   0xb LB: > { %1968 = sst [smem:[#allocation10_spill]] %s1433_s15  ;;  %s1185_s22 = sadd.s32 4294967295, %s1457_s21   ;;  %s1457_s21 = sphi %s1505_s21, %s17_s21   ;;  %s1453_s20 = sphi %s1503_s20, %s2000_s20   ;;  %s1449_s19 = sphi %s1501_s19, %s1993_s19   ;;  %s1445_s18 = sphi %s1499_s18, %s1999_s18   ;;  %s1441_s17 = sphi %s1497_s17, %s1998_s17   ;;  %s1437_s16 = sphi %s1495_s16, %s1991_s16   ;;  %s1433_s15 = sphi %s1493_s15, %s1997_s15   ;;  %s1429_s14 = sphi %s1491_s14, %s1996_s14   ;;  %s1425_s13 = sphi %s1489_s13, %s1995_s13   ;;  %s1421_s12 = sphi %s1487_s12, %s1994_s12  }
   0xc   : > { %1969 = sst [smem:[#allocation11_spill]] %s1437_s16  ;;  %p107_p0 = scmp.ne.s32.totalorder %s1425_s13, %s1421_s12 }
   0xd   : > { %1970 = sst [smem:[#allocation12_spill]] %s1441_s17  ;;  %p1537_p1 = scmp.eq.s32.totalorder %s1185_s22, 0 }
   0xe   : > { %1971 = sst [smem:[#allocation13_spill]] %s1449_s19  ;;  %p1541_p2 = scmp.eq.s32.totalorder %s1185_s22, 11 }
   0xf   : > { %p1187_p3 = scmp.ge.s32.totalorder %s1457_s21, 1  ;;  %p148_p4 = scmp.lt.s32.totalorder %s1457_s21, 13 }
  0x10   : > { %p1549_p5 = por %p1537_p1, %p107_p0  ;;  %s1976_s0 = sld [smem:[#allocation17_spill]] }
  0x11   : > { %p1553_p6 = pnand %p1187_p3, %p148_p4  ;;  %s1459_s30 = smov [#allocation3]  }
  0x12   : > { %s29_s4 = sadd.s32 1, %s1445_s18  ;;  %s32_s5 = sadd.s32 1, %s1449_s19 }
  0x13   : > { %p1214_p7 = pneg %p1553_p6  ;;  %p30_p9 = scmp.ge.s32.totalorder %s29_s4, 2 }
  0x14   : > { %s36_s6 = sadd.s32 1, %s1453_s20  ;;  %p101_p10 = scmp.ne.s32.totalorder %s1429_s14, %s1425_s13 }
  0x15   : > { %p1215_p8 = pnand %p1214_p7, %p1537_p1  ;;  %s2002_s4 = smov (%p30_p9, %s29_s4), 0 }
  0x16   : > { %s160_s29 = sshll.u32 %s1976_s0, 4  ;;  %1977 = sst [smem:[#allocation14_spill]] %s2002_s4  ;;  %s161_s29 = int_to_ptr.vmem [resolvable:$true] %s160_s29 }
  0x17   : > { %1217 = dma.vmem_to_smem (!%p1215_p8), %s161_s29, 64, %s1459_s30, [#allocation5]  }
  0x18   : > { %s2004_s5 = smov (!%p30_p9, %s32_s5), %s1449_s19  ;;  %s90_s8 = ssub.s32 %s1445_s18, %s2002_s4 }
  0x19   : > { %p102_p11 = scmp.eq.s32.totalorder %s1457_s21, 0  ;;  %p34_p12 = scmp.ge.s32.totalorder %s2004_s5, 3 }
  0x1a   : > { %p1578_p13 = por %p1541_p2, %p101_p10  ;;  %p1223_p3 = scmp.lt.s32.totalorder %s1457_s21, 12 }
  0x1b   : > { %p1582_p0 = por %p102_p11, %p101_p10  ;;  %s2006_s5 = smov (%p34_p12, %s2004_s5), 0 }
  0x1c   : > { %s1978_s9 = scalar_select %p1578_p13, 1, 0 }
  0x1d   : > { %1981 = sst [smem:[#allocation16_spill]] %s2006_s5  ;;  %s2008_s6 = smov (!%p34_p12, %s36_s6), %s1453_s20 }
  0x1e   : > { %1979 = sst [smem:[#allocation15_spill]] %s1978_s9  ;;  %s88_s11 = ssub.s32 %s1449_s19, %s2006_s5 }
  0x1f   : > { %s178_s12 = sand.u32 1, %s1429_s14   ;;  %p38_p4 = scmp.ge.s32.totalorder %s2008_s6, 2 }
  0x20   : > { %s1190_s22 = sshll.u32 %s178_s12, 3  ;;  %s1191_s24 = sshll.u32 %s1449_s19, 1 }
  0x21   : > { %s2010_s6 = smov (%p38_p4, %s2008_s6), 0  ;;  %s186_s27 = sadd.s32 %s1445_s18, %s1191_s24 }
  0x22   : > { %s87_s28 = ssub.s32 %s1453_s20, %s2010_s6  ;;  %s1206_s29 = smul.u32 6, %s1453_s20 }
  0x23   : > { %s89_s30 = sor.u32 %s88_s11, %s87_s28  ;;  %s182_s7 = scalar_lea.vmem [#allocation6], %s1190_s22 }
  0x24   : > { %s194_s0 = sshll.u32 %s182_s7, 4  ;;  %s91_s4 = sor.u32 %s90_s8, %s89_s30  ;;  %s195_s0 = int_to_ptr.vmem [resolvable:$true] %s194_s0 }
  0x25   : > { %s188_s3 = sadd.s32 %s1206_s29, %s186_s27  ;;  %p92_p2 = scmp.eq.s32.totalorder %s91_s4, 0 }
  0x26   : > { %s1192_s5 = sshll.u32 %s188_s3, 3  ;;  %s1982_s19 = sadd.s32 1, %s1429_s14 }
  0x27   : > { %s190_s1 = scalar_lea.hbm %s1958_s2, %s1192_s5  ;;  %p1219_p7 = pnand %p1223_p3, %p1582_p0 }
  0x28   : > { %s1606_s15 = scalar_select %p92_p2, %s1429_s14, %s1982_s19  }
  0x29   : > { %s192_s16 = sshll.u32 %s190_s1, 4  ;;  %s179_s11 = scalar_lea.sflag [#allocation4], %s178_s12  ;;  %s193_s16 = int_to_ptr.hbm [resolvable:$true] %s192_s16 }
  0x2a   : > { %1221 = dma.hbm_to_vmem [thread:$0]  (!%p1219_p7), %s193_s16, 128, %s195_s0, %s179_s11  }
  0x2b   : > { %203 = sbr.rel (%p1553_p6) target bundleno = 654 (0x28e), region = 32 }
  0x30   : > { %1412 = dma.done.wait (%p1537_p1), [#allocation5], 64  }
  0x31   : > { %1414 = vsyncadd (%p1537_p1), [#allocation5], 4294967232  ;;  %s1619_s3 = sand.u32 1, %s1425_s13  }
  0x32   : > { %s1195_s1 = sshll.u32 %s1619_s3, 3  ;;  %s211_s17 = scalar_lea.sflag [#allocation4], %s1619_s3 }
  0x33   : > { %s214_s19 = scalar_lea.vmem [#allocation6], %s1195_s1 }
  0x34   : > { %1416 = dma.done.wait (%p1549_p5), %s211_s17, 128  }
  0x35   : > { %1418 = vsyncadd (%p1549_p5), %s211_s17, 4294967168 }
  0x36   : > { %220 = sfence }
  0x37   : > { %s1983_s0 = sld [smem:[#allocation11_spill]]  ;;  %v250_v0 = vld [vmem:[%s214_s19] sm:$0x3]  ;;  %v274_v1 = vld [vmem:[%s214_s19 + $0x2] sm:$0x1]  ;;  %s1460_s12 = smov 112  }
  0x38   : > { %v1199_v2 = vmul.f32 -1.442695, %v250_v0  ;;  %v275_v3 = vmul.f32 1.442695, %v274_v1  ;;  %v280_v4 = vld [vmem:[%s214_s19 + $0x3] sm:$0x1] }
  0x39   : > { %v286_v5 = vld [vmem:[%s214_s19 + $0x4] sm:$0xf]  ;;  %s1984_s4 = sld [smem:[#allocation10_spill]]  ;;  %v281_v6 = vmul.f32 1.442695, %v280_v4  ;;  %s1461_s22 = smov 96  }
  0x3a   : > { %1314 = vpow2.f32 %v1199_v2  ;;  %v1200_v7 = vmul.f32 -1.442695, %v286_v5  ;;  %s1985_s9 = sld [smem:[#allocation18_spill]]  ;;  %s1462_s24 = smov 80   ;;  %vm370_vm8 = vcmask 57344  }
  0x3b   : > { %1316 = vpow2.f32 %v275_v3  ;;  %s1463_s27 = smov 64   ;;  %s1464_s28 = smov 48  }
  0x3c   : > { %1318 = vpow2.f32 %v281_v6  ;;  %s1465_s29 = smov 32   ;;  %s1466_s30 = smov 16  }
  0x3d   : > { %s1198_s16 = sshll.u32 %s1983_s0, 7  ;;  %1320 = vpow2.f32 %v1200_v7  ;;  %s1196_s11 = sshll.u32 %s1619_s3, 7 }
  0x3e   : > { %s247_s23 = sld [smem:[#allocation3 + %s1198_s16]]  ;;  %s248_s26 = sadd.s32 1, %s1198_s16 }
  0x3f   : > { %s249_s5 = sld [smem:[#allocation3 + %s248_s26]]  ;;  %p242_p1 = scmp.lt.s32.totalorder %s1984_s4, 1 }
  0x40   : > { %v1315_v9 = vpop.eup %1314  ;;  %s1634_s1 = scalar_lea.vmem [#allocation7], %s1196_s11  ;;  %s1987_s17 = sld [smem:[#allocation11_spill]] (%p1578_p13) }
  0x41   : > { %v1317_v10 = vpop.eup %1316  ;;  %v254_v11 = vadd.f32 1.0, %v1315_v9  ;;  %s2012_s4 = smov (!%p242_p1, %s1984_s4), 1  ;;  %s1988_s19 = sld [smem:[#allocation12_spill]] (%p1578_p13) }
  0x42   : > { %v1319_v13 = vpop.eup %1318  ;;  %s1197_s25 = sshll.u32 %s2012_s4, 1  ;;  %s1989_s0 = sld [smem:[#allocation10_spill]] (%p1578_p13) }
  0x43   : > { %v1321_v15 = vpop.eup %1320  ;;  %1322 = vrcp.f32 %v254_v11  ;;  %v266_v20 = vand.u32 2147483648, %v254_v11  ;;  %vm260_vm0 = vweird.f32 %v254_v11  ;;  %v264_v23 = vand.u32 2147483647, %v254_v11  ;;  %s245_s10 = scalar_lea.vmem %s1985_s9, %s1197_s25  ;;  %s1990_s8 = sld [smem:[#allocation19_spill]] (%p1578_p13) }
  0x44   : > { %v277_v8 = vstv %s247_s23  ;;  %v290_v17 = vadd.f32 1.0, %v1321_v15  ;;  %v270_v31 = vld [vmem:[%s245_s10] sm:$0x3] }
  0x45   : > { %v283_v12 = vstv %s249_s5  ;;  %v278_v14 = vmul.f32 %v1317_v10, %v277_v8  ;;  %v267_v26 = vor.u32 1.1754944e-38, %v266_v20  ;;  %vm265_vm5 = vcmp.eq.f32.partialorder %v264_v23, 8.507059e+37 }
  0x46   : > { %v284_v16 = vmul.f32 %v1319_v13, %v283_v12  ;;  %1324 = vrcp.f32 %v290_v17  ;;  %v302_v27 = vand.u32 2147483648, %v290_v17  ;;  %vm296_vm3 = vweird.f32 %v290_v17  ;;  %s1202_s16 = sshll.u32 (%p1578_p13), %s1987_s17, 5 }
  0x47   : > { %279 = vst [vmem:[#allocation2 + $0x2] sm:$0x1] %v278_v14  ;;  %v300_v29 = vand.u32 2147483647, %v290_v17  ;;  %s1207_s23 = smul.u32 (%p1578_p13), 96, %s1988_s19 }
  0x48   : > { %285 = vst [vmem:[#allocation2 + $0x3] sm:$0x1] %v284_v16  ;;  %v303_v34 = vor.u32 1.1754944e-38, %v302_v27  ;;  %s976_s26 = sadd.s32 (%p1578_p13), %s1989_s0, %s1202_s16 }
  0x49   : > { %v1323_v18 = vpop.eup %1322  ;;  %vm301_vm7 = vcmp.eq.f32.partialorder %v300_v29, 8.507059e+37  ;;  %s978_s4 = sadd.s32 (%p1578_p13), %s1207_s23, %s976_s26 }
  0x4a   : > { %v256_v19 = vmul.f32 %v1323_v18, %v254_v11  ;;  %vm261_vm1 = vweird.f32 %v1323_v18  ;;  %s1203_s5 = sshll.u32 (%p1578_p13), %s978_s4, 3 }
  0x4b   : > { %vm262_vm2 = vmor %vm260_vm0, %vm261_vm1  ;;  %s980_s9 = scalar_lea.vmem (%p1578_p13), %s1990_s8, %s1203_s5 }
  0x4c   : > { %v1325_v21 = vpop.eup %1324  ;;  %v257_v22 = vsub.f32 1.0, %v256_v19 }
  0x4d   : > { %v292_v24 = vmul.f32 %v1325_v21, %v290_v17  ;;  %vm297_vm4 = vweird.f32 %v1325_v21 }
  0x4e   : > { %v258_v25 = vmul.f32 %v1323_v18, %v257_v22  ;;  %vm298_vm6 = vmor %vm296_vm3, %vm297_vm4 }
  0x4f   : > { %v293_v28 = vsub.f32 1.0, %v292_v24 }
  0x50   : > { %v259_v30 = vadd.f32 %v1323_v18, %v258_v25 }
  0x51   : > { %v294_v32 = vmul.f32 %v1325_v21, %v293_v28 }
  0x52   : > { %v263_v33 = vsel %vm262_vm2, %v1323_v18, %v259_v30 }
  0x53   : > { %v268_v35 = vsel %vm265_vm5, %v267_v26, %v263_v33  ;;  %v295_v36 = vadd.f32 %v1325_v21, %v294_v32 }
  0x54   : > { %v271_v37 = vadd.f32 %v270_v31, %v268_v35 }
  0x55   : > { %v299_v38 = vsel %vm298_vm6, %v1325_v21, %v295_v36 }
  0x56   : > { %v272_v39 = vmul.f32 8.0, %v271_v37  ;;  %v304_v40 = vsel %vm301_vm7, %v303_v34, %v299_v38 }
  0x57   : > { %306 = vst [vmem:[#allocation2 + $0x4] sm:$0xf] %v304_v40 }
  0x58   : > { %273 = vst [vmem:[#allocation2] sm:$0x3] %v272_v39 }
  0x5f   : > { %v387_v41 = vld [vmem:[#allocation2] sm:$0xff] }
  0x60   : > { %389 = vrot.lane.b32.xlu0 %v387_v41, %s1460_s12  ;;  %472 = vrot.lane.b32.xlu1 %v387_v41, %s1461_s22 }
  0x61   : > { %555 = vrot.lane.b32.xlu2 %v387_v41, %s1462_s24 }
  0x69   : > { %638 = vrot.lane.b32.xlu2 %v387_v41, %s1463_s27 }
  0x71   : > { %721 = vrot.lane.b32.xlu2 %v387_v41, %s1464_s28 }
  0x82   : > { %308 = vxpose.xlu0.b32.start.end [1/1] (short) (narrow) %v387_v41, 16 }
  0xbb   : > { %v556_v42 = vpop.permute.xlu2 %555 }
  0xc3   : > { %v639_v43 = vpop.permute.xlu2 %638 }
  0xc4   : > { %641 = vxpose.xlu0.b32.start.end [1/1] (short) (narrow) %v639_v43, 16 }
  0xcb   : > { %v722_v46 = vpop.permute.xlu2 %721 }
  0xd2   : > { %v390_v44 = vpop.permute.xlu0 %389  ;;  %v473_v45 = vpop.permute.xlu1 %472 }
  0xd3   : > { %392 = vxpose.xlu1.b32.start.end [1/1] (short) (narrow) %v390_v44, 16  ;;  %475 = vxpose.xlu2.b32.start.end [1/1] (short) (narrow) %v473_v45, 16 }
  0xe3   : > { %558 = vxpose.xlu1.b32.start.end [1/1] (short) (narrow) %v556_v42, 16  ;;  %724 = vxpose.xlu2.b32.start.end [1/1] (short) (narrow) %v722_v46, 16 }
 0x126   : > { %v324_v46 = vpop.trf.xlu0 }
 0x127   : > { %371 = vst.msk [vmem:[%s1634_s1] sm:$0x1] %vm370_vm8, %v324_v46 }
 0x145   : > { %804 = vrot.lane.b32.xlu1 %v387_v41, %s1465_s29 }
 0x154   : > { %887 = vrot.lane.b32.xlu2 %v387_v41, %s1466_s30 }
 0x16c   : > { %v491_v47 = vpop.trf.xlu2 }
 0x16d   : > { %v509_v48 = vrot.slane %v491_v47, 1  ;;  %v510_v49 = vrot.slane %v491_v47, 2  ;;  %v511_v50 = vrot.slane %v491_v47, 3  ;;  %537 = vst.msk [vmem:[%s1634_s1 + $0x2] sm:$0x1] %vm370_vm8, %v491_v47  ;;  %v512_v51 = vrot.slane %v491_v47, 4 }
 0x16e   : > { %v513_v52 = vrot.slane %v491_v47, 5  ;;  %v514_v53 = vrot.slane %v491_v47, 6  ;;  %v515_v54 = vrot.slane %v491_v47, 7 }
 0x16f   : > { %538 = vst.msk [vmem:[%s1634_s1 + $0xa] sm:$0x1] %vm370_vm8, %v509_v48  ;;  %v342_v48 = vrot.slane %v324_v46, 1 }
 0x170   : > { %539 = vst.msk [vmem:[%s1634_s1 + $0x12] sm:$0x1] %vm370_vm8, %v510_v49  ;;  %v343_v49 = vrot.slane %v324_v46, 2 }
 0x171   : > { %540 = vst.msk [vmem:[%s1634_s1 + $0x1a] sm:$0x1] %vm370_vm8, %v511_v50  ;;  %v344_v50 = vrot.slane %v324_v46, 3 }
 0x172   : > { %541 = vst.msk [vmem:[%s1634_s1 + $0x22] sm:$0x1] %vm370_vm8, %v512_v51  ;;  %v345_v51 = vrot.slane %v324_v46, 4 }
 0x173   : > { %542 = vst.msk [vmem:[%s1634_s1 + $0x2a] sm:$0x1] %vm370_vm8, %v513_v52  ;;  %v346_v52 = vrot.slane %v324_v46, 5 }
 0x174   : > { %543 = vst.msk [vmem:[%s1634_s1 + $0x32] sm:$0x1] %vm370_vm8, %v514_v53  ;;  %v1650_v55 = vpop.trf.xlu2  ;;  %v347_v53 = vrot.slane %v324_v46, 6 }
 0x175   : > { %544 = vst.msk [vmem:[%s1634_s1 + $0x3a] sm:$0x1] %vm370_vm8, %v515_v54  ;;  %v516_v56 = vrot.slane %v1650_v55, 1  ;;  %v517_v57 = vrot.slane %v1650_v55, 2  ;;  %v518_v18 = vrot.slane %v1650_v55, 3  ;;  %v519_v19 = vrot.slane %v1650_v55, 4  ;;  %v325_v54 = vpop.trf.xlu0 }
 0x176   : > { %545 = vst.msk [vmem:[%s1634_s1 + $0x42] sm:$0x1] %vm370_vm8, %v1650_v55  ;;  %v520_v20 = vrot.slane %v1650_v55, 5  ;;  %v521_v21 = vrot.slane %v1650_v55, 6  ;;  %v522_v23 = vrot.slane %v1650_v55, 7  ;;  %v348_v55 = vrot.slane %v324_v46, 7 }
 0x177   : > { %v408_v58 = vpop.trf.xlu1  ;;  %546 = vst.msk [vmem:[%s1634_s1 + $0x4a] sm:$0x1] %vm370_vm8, %v516_v56  ;;  %v349_v56 = vrot.slane %v325_v54, 1 }
 0x178   : > { %v426_v59 = vrot.slane %v408_v58, 1  ;;  %v427_v60 = vrot.slane %v408_v58, 2  ;;  %v428_v61 = vrot.slane %v408_v58, 3  ;;  %454 = vst.msk [vmem:[%s1634_s1 + $0x1] sm:$0x1] %vm370_vm8, %v408_v58  ;;  %v429_v62 = vrot.slane %v408_v58, 4 }
 0x179   : > { %547 = vst.msk [vmem:[%s1634_s1 + $0x52] sm:$0x1] %vm370_vm8, %v517_v57  ;;  %v430_v63 = vrot.slane %v408_v58, 5  ;;  %v431_v0 = vrot.slane %v408_v58, 6  ;;  %v432_v1 = vrot.slane %v408_v58, 7  ;;  %v350_v57 = vrot.slane %v325_v54, 2 }
 0x17a   : > { %455 = vst.msk [vmem:[%s1634_s1 + $0x9] sm:$0x1] %vm370_vm8, %v426_v59  ;;  %v351_v58 = vrot.slane %v325_v54, 3  ;;  %v352_v59 = vrot.slane %v325_v54, 4 }
 0x17b   : > { %456 = vst.msk [vmem:[%s1634_s1 + $0x11] sm:$0x1] %vm370_vm8, %v427_v60 }
 0x17c   : > { %457 = vst.msk [vmem:[%s1634_s1 + $0x19] sm:$0x1] %vm370_vm8, %v428_v61  ;;  %v740_v28 = vpop.trf.xlu2  ;;  %v353_v61 = vrot.slane %v325_v54, 5 }
 0x17d   : > { %458 = vst.msk [vmem:[%s1634_s1 + $0x21] sm:$0x1] %vm370_vm8, %v429_v62  ;;  %v758_v32 = vrot.slane %v740_v28, 1  ;;  %v759_v33 = vrot.slane %v740_v28, 2  ;;  %v760_v34 = vrot.slane %v740_v28, 3  ;;  %v761_v35 = vrot.slane %v740_v28, 4 }
 0x17e   : > { %459 = vst.msk [vmem:[%s1634_s1 + $0x29] sm:$0x1] %vm370_vm8, %v430_v63  ;;  %v762_v36 = vrot.slane %v740_v28, 5  ;;  %v763_v37 = vrot.slane %v740_v28, 6  ;;  %v764_v39 = vrot.slane %v740_v28, 7  ;;  %v354_v62 = vrot.slane %v325_v54, 6  ;;  %v657_v63 = vpop.trf.xlu0 }
 0x17f   : > { %460 = vst.msk [vmem:[%s1634_s1 + $0x31] sm:$0x1] %vm370_vm8, %v431_v0  ;;  %v409_v2 = vpop.trf.xlu1  ;;  %v355_v0 = vrot.slane %v325_v54, 7 }
 0x180   : > { %461 = vst.msk [vmem:[%s1634_s1 + $0x39] sm:$0x1] %vm370_vm8, %v432_v1  ;;  %v433_v3 = vrot.slane %v409_v2, 1  ;;  %v434_v4 = vrot.slane %v409_v2, 2  ;;  %v435_v5 = vrot.slane %v409_v2, 3  ;;  %v436_v6 = vrot.slane %v409_v2, 4 }
 0x181   : > { %462 = vst.msk [vmem:[%s1634_s1 + $0x41] sm:$0x1] %vm370_vm8, %v409_v2  ;;  %v437_v7 = vrot.slane %v409_v2, 5  ;;  %v438_v8 = vrot.slane %v409_v2, 6  ;;  %v439_v9 = vrot.slane %v409_v2, 7  ;;  %v675_v1 = vrot.slane %v657_v63, 1 }
 0x182   : > { %463 = vst.msk [vmem:[%s1634_s1 + $0x49] sm:$0x1] %vm370_vm8, %v433_v3  ;;  %v676_v2 = vrot.slane %v657_v63, 2  ;;  %v677_v3 = vrot.slane %v657_v63, 3 }
 0x183   : > { %464 = vst.msk [vmem:[%s1634_s1 + $0x51] sm:$0x1] %vm370_vm8, %v434_v4  ;;  %v678_v4 = vrot.slane %v657_v63, 4 }
 0x184   : > { %465 = vst.msk [vmem:[%s1634_s1 + $0x59] sm:$0x1] %vm370_vm8, %v435_v5  ;;  %v741_v38 = vpop.trf.xlu2  ;;  %v679_v5 = vrot.slane %v657_v63, 5 }
 0x185   : > { %466 = vst.msk [vmem:[%s1634_s1 + $0x61] sm:$0x1] %vm370_vm8, %v436_v6  ;;  %v765_v40 = vrot.slane %v741_v38, 1  ;;  %v766_v41 = vrot.slane %v741_v38, 2  ;;  %v767_v42 = vrot.slane %v741_v38, 3  ;;  %v768_v43 = vrot.slane %v741_v38, 4 }
 0x186   : > { %467 = vst.msk [vmem:[%s1634_s1 + $0x69] sm:$0x1] %vm370_vm8, %v437_v7  ;;  %v769_v44 = vrot.slane %v741_v38, 5  ;;  %v770_v45 = vrot.slane %v741_v38, 6  ;;  %v771_v47 = vrot.slane %v741_v38, 7  ;;  %v680_v6 = vrot.slane %v657_v63, 6  ;;  %v658_v7 = vpop.trf.xlu0 }
 0x187   : > { %468 = vst.msk [vmem:[%s1634_s1 + $0x71] sm:$0x1] %vm370_vm8, %v438_v8  ;;  %v574_v10 = vpop.trf.xlu1  ;;  %v681_v8 = vrot.slane %v657_v63, 7 }
 0x188   : > { %469 = vst.msk [vmem:[%s1634_s1 + $0x79] sm:$0x1] %vm370_vm8, %v439_v9  ;;  %v592_v11 = vrot.slane %v574_v10, 1  ;;  %v593_v12 = vrot.slane %v574_v10, 2  ;;  %v594_v13 = vrot.slane %v574_v10, 3  ;;  %v595_v14 = vrot.slane %v574_v10, 4 }
 0x189   : > { %620 = vst.msk [vmem:[%s1634_s1 + $0x3] sm:$0x1] %vm370_vm8, %v574_v10  ;;  %v596_v15 = vrot.slane %v574_v10, 5  ;;  %v597_v16 = vrot.slane %v574_v10, 6  ;;  %v598_v17 = vrot.slane %v574_v10, 7  ;;  %v682_v9 = vrot.slane %v658_v7, 1 }
 0x18a   : > { %621 = vst.msk [vmem:[%s1634_s1 + $0xb] sm:$0x1] %vm370_vm8, %v592_v11  ;;  %v683_v10 = vrot.slane %v658_v7, 2 }
 0x18b   : > { %622 = vst.msk [vmem:[%s1634_s1 + $0x13] sm:$0x1] %vm370_vm8, %v593_v12  ;;  %v684_v12 = vrot.slane %v658_v7, 3 }
 0x18c   : > { %623 = vst.msk [vmem:[%s1634_s1 + $0x1b] sm:$0x1] %vm370_vm8, %v594_v13  ;;  %v685_v13 = vrot.slane %v658_v7, 4 }
 0x18d   : > { %624 = vst.msk [vmem:[%s1634_s1 + $0x23] sm:$0x1] %vm370_vm8, %v595_v14  ;;  %v686_v14 = vrot.slane %v658_v7, 5 }
 0x18e   : > { %625 = vst.msk [vmem:[%s1634_s1 + $0x2b] sm:$0x1] %vm370_vm8, %v596_v15  ;;  %v687_v15 = vrot.slane %v658_v7, 6 }
 0x18f   : > { %626 = vst.msk [vmem:[%s1634_s1 + $0x33] sm:$0x1] %vm370_vm8, %v597_v16  ;;  %v575_v22 = vpop.trf.xlu1  ;;  %v688_v16 = vrot.slane %v658_v7, 7 }
 0x190   : > { %627 = vst.msk [vmem:[%s1634_s1 + $0x3b] sm:$0x1] %vm370_vm8, %v598_v17  ;;  %v599_v24 = vrot.slane %v575_v22, 1  ;;  %v600_v25 = vrot.slane %v575_v22, 2  ;;  %v601_v26 = vrot.slane %v575_v22, 3  ;;  %v602_v27 = vrot.slane %v575_v22, 4 }
 0x191   : > { %548 = vst.msk [vmem:[%s1634_s1 + $0x5a] sm:$0x1] %vm370_vm8, %v518_v18  ;;  %v603_v29 = vrot.slane %v575_v22, 5  ;;  %v604_v30 = vrot.slane %v575_v22, 6  ;;  %v605_v31 = vrot.slane %v575_v22, 7 }
 0x192   : > { %549 = vst.msk [vmem:[%s1634_s1 + $0x62] sm:$0x1] %vm370_vm8, %v519_v19 }
 0x193   : > { %550 = vst.msk [vmem:[%s1634_s1 + $0x6a] sm:$0x1] %vm370_vm8, %v520_v20 }
 0x194   : > { %551 = vst.msk [vmem:[%s1634_s1 + $0x72] sm:$0x1] %vm370_vm8, %v521_v21 }
 0x195   : > { %552 = vst.msk [vmem:[%s1634_s1 + $0x7a] sm:$0x1] %vm370_vm8, %v522_v23 }
 0x196   : > { %628 = vst.msk [vmem:[%s1634_s1 + $0x43] sm:$0x1] %vm370_vm8, %v575_v22 }
 0x197   : > { %629 = vst.msk [vmem:[%s1634_s1 + $0x4b] sm:$0x1] %vm370_vm8, %v599_v24 }
 0x198   : > { %630 = vst.msk [vmem:[%s1634_s1 + $0x53] sm:$0x1] %vm370_vm8, %v600_v25 }
 0x199   : > { %631 = vst.msk [vmem:[%s1634_s1 + $0x5b] sm:$0x1] %vm370_vm8, %v601_v26 }
 0x19a   : > { %632 = vst.msk [vmem:[%s1634_s1 + $0x63] sm:$0x1] %vm370_vm8, %v602_v27 }
 0x19b   : > { %633 = vst.msk [vmem:[%s1634_s1 + $0x6b] sm:$0x1] %vm370_vm8, %v603_v29 }
 0x19c   : > { %634 = vst.msk [vmem:[%s1634_s1 + $0x73] sm:$0x1] %vm370_vm8, %v604_v30 }
 0x19d   : > { %635 = vst.msk [vmem:[%s1634_s1 + $0x7b] sm:$0x1] %vm370_vm8, %v605_v31 }
 0x19e   : > { %786 = vst.msk [vmem:[%s1634_s1 + $0x5] sm:$0x1] %vm370_vm8, %v740_v28 }
 0x19f   : > { %787 = vst.msk [vmem:[%s1634_s1 + $0xd] sm:$0x1] %vm370_vm8, %v758_v32 }
 0x1a0   : > { %788 = vst.msk [vmem:[%s1634_s1 + $0x15] sm:$0x1] %vm370_vm8, %v759_v33 }
 0x1a1   : > { %789 = vst.msk [vmem:[%s1634_s1 + $0x1d] sm:$0x1] %vm370_vm8, %v760_v34 }
 0x1a2   : > { %790 = vst.msk [vmem:[%s1634_s1 + $0x25] sm:$0x1] %vm370_vm8, %v761_v35 }
 0x1a3   : > { %791 = vst.msk [vmem:[%s1634_s1 + $0x2d] sm:$0x1] %vm370_vm8, %v762_v36 }
 0x1a4   : > { %792 = vst.msk [vmem:[%s1634_s1 + $0x35] sm:$0x1] %vm370_vm8, %v763_v37 }
 0x1a5   : > { %793 = vst.msk [vmem:[%s1634_s1 + $0x3d] sm:$0x1] %vm370_vm8, %v764_v39 }
 0x1a6   : > { %794 = vst.msk [vmem:[%s1634_s1 + $0x45] sm:$0x1] %vm370_vm8, %v741_v38 }
 0x1a7   : > { %795 = vst.msk [vmem:[%s1634_s1 + $0x4d] sm:$0x1] %vm370_vm8, %v765_v40 }
 0x1a8   : > { %796 = vst.msk [vmem:[%s1634_s1 + $0x55] sm:$0x1] %vm370_vm8, %v766_v41 }
 0x1a9   : > { %797 = vst.msk [vmem:[%s1634_s1 + $0x5d] sm:$0x1] %vm370_vm8, %v767_v42 }
 0x1aa   : > { %798 = vst.msk [vmem:[%s1634_s1 + $0x65] sm:$0x1] %vm370_vm8, %v768_v43 }
 0x1ab   : > { %799 = vst.msk [vmem:[%s1634_s1 + $0x6d] sm:$0x1] %vm370_vm8, %v769_v44 }
 0x1ac   : > { %800 = vst.msk [vmem:[%s1634_s1 + $0x75] sm:$0x1] %vm370_vm8, %v770_v45 }
 0x1ad   : > { %801 = vst.msk [vmem:[%s1634_s1 + $0x7d] sm:$0x1] %vm370_vm8, %v771_v47 }
 0x1ae   : > { %372 = vst.msk [vmem:[%s1634_s1 + $0x8] sm:$0x1] %vm370_vm8, %v342_v48  ;;  %v888_v11 = vpop.permute.xlu2 %887 }
 0x1af   : > { %373 = vst.msk [vmem:[%s1634_s1 + $0x10] sm:$0x1] %vm370_vm8, %v343_v49 }
 0x1b0   : > { %374 = vst.msk [vmem:[%s1634_s1 + $0x18] sm:$0x1] %vm370_vm8, %v344_v50 }
 0x1b1   : > { %375 = vst.msk [vmem:[%s1634_s1 + $0x20] sm:$0x1] %vm370_vm8, %v345_v51 }
 0x1b2   : > { %376 = vst.msk [vmem:[%s1634_s1 + $0x28] sm:$0x1] %vm370_vm8, %v346_v52 }
 0x1b3   : > { %377 = vst.msk [vmem:[%s1634_s1 + $0x30] sm:$0x1] %vm370_vm8, %v347_v53 }
 0x1b4   : > { %378 = vst.msk [vmem:[%s1634_s1 + $0x38] sm:$0x1] %vm370_vm8, %v348_v55 }
 0x1b5   : > { %379 = vst.msk [vmem:[%s1634_s1 + $0x40] sm:$0x1] %vm370_vm8, %v325_v54 }
 0x1b6   : > { %380 = vst.msk [vmem:[%s1634_s1 + $0x48] sm:$0x1] %vm370_vm8, %v349_v56 }
 0x1b7   : > { %v805_v60 = vpop.permute.xlu1 %804  ;;  %381 = vst.msk [vmem:[%s1634_s1 + $0x50] sm:$0x1] %vm370_vm8, %v350_v57 }
 0x1b8   : > { %807 = vxpose.xlu0.b32.start.end [1/1] (short) (narrow) %v805_v60, 16  ;;  %382 = vst.msk [vmem:[%s1634_s1 + $0x58] sm:$0x1] %vm370_vm8, %v351_v58 }
 0x1b9   : > { %383 = vst.msk [vmem:[%s1634_s1 + $0x60] sm:$0x1] %vm370_vm8, %v352_v59 }
 0x1ba   : > { %384 = vst.msk [vmem:[%s1634_s1 + $0x68] sm:$0x1] %vm370_vm8, %v353_v61 }
 0x1bb   : > { %385 = vst.msk [vmem:[%s1634_s1 + $0x70] sm:$0x1] %vm370_vm8, %v354_v62 }
 0x1bc   : > { %386 = vst.msk [vmem:[%s1634_s1 + $0x78] sm:$0x1] %vm370_vm8, %v355_v0 }
 0x1bd   : > { %703 = vst.msk [vmem:[%s1634_s1 + $0x4] sm:$0x1] %vm370_vm8, %v657_v63 }
 0x1be   : > { %704 = vst.msk [vmem:[%s1634_s1 + $0xc] sm:$0x1] %vm370_vm8, %v675_v1 }
 0x1bf   : > { %705 = vst.msk [vmem:[%s1634_s1 + $0x14] sm:$0x1] %vm370_vm8, %v676_v2 }
 0x1c0   : > { %706 = vst.msk [vmem:[%s1634_s1 + $0x1c] sm:$0x1] %vm370_vm8, %v677_v3 }
 0x1c1   : > { %707 = vst.msk [vmem:[%s1634_s1 + $0x24] sm:$0x1] %vm370_vm8, %v678_v4 }
 0x1c2   : > { %708 = vst.msk [vmem:[%s1634_s1 + $0x2c] sm:$0x1] %vm370_vm8, %v679_v5 }
 0x1c3   : > { %709 = vst.msk [vmem:[%s1634_s1 + $0x34] sm:$0x1] %vm370_vm8, %v680_v6 }
 0x1c4   : > { %710 = vst.msk [vmem:[%s1634_s1 + $0x3c] sm:$0x1] %vm370_vm8, %v681_v8 }
 0x1c5   : > { %711 = vst.msk [vmem:[%s1634_s1 + $0x44] sm:$0x1] %vm370_vm8, %v658_v7 }
 0x1c6   : > { %712 = vst.msk [vmem:[%s1634_s1 + $0x4c] sm:$0x1] %vm370_vm8, %v682_v9 }
 0x1c7   : > { %713 = vst.msk [vmem:[%s1634_s1 + $0x54] sm:$0x1] %vm370_vm8, %v683_v10 }
 0x1c8   : > { %890 = vxpose.xlu0.b32.start.end [1/1] (short) (narrow) %v888_v11, 16  ;;  %714 = vst.msk [vmem:[%s1634_s1 + $0x5c] sm:$0x1] %vm370_vm8, %v684_v12 }
 0x1c9   : > { %715 = vst.msk [vmem:[%s1634_s1 + $0x64] sm:$0x1] %vm370_vm8, %v685_v13 }
 0x1ca   : > { %716 = vst.msk [vmem:[%s1634_s1 + $0x6c] sm:$0x1] %vm370_vm8, %v686_v14 }
 0x1cb   : > { %717 = vst.msk [vmem:[%s1634_s1 + $0x74] sm:$0x1] %vm370_vm8, %v687_v15 }
 0x1cc   : > { %718 = vst.msk [vmem:[%s1634_s1 + $0x7c] sm:$0x1] %vm370_vm8, %v688_v16 }
 0x25c   : > { %v823_v17 = vpop.trf.xlu0 }
 0x25d   : > { %v841_v18 = vrot.slane %v823_v17, 1  ;;  %v842_v19 = vrot.slane %v823_v17, 2  ;;  %v843_v20 = vrot.slane %v823_v17, 3  ;;  %869 = vst.msk [vmem:[%s1634_s1 + $0x6] sm:$0x1] %vm370_vm8, %v823_v17  ;;  %v844_v21 = vrot.slane %v823_v17, 4 }
 0x25e   : > { %v845_v22 = vrot.slane %v823_v17, 5  ;;  %v846_v23 = vrot.slane %v823_v17, 6  ;;  %v847_v24 = vrot.slane %v823_v17, 7 }
 0x25f   : > { %870 = vst.msk [vmem:[%s1634_s1 + $0xe] sm:$0x1] %vm370_vm8, %v841_v18 }
 0x260   : > { %871 = vst.msk [vmem:[%s1634_s1 + $0x16] sm:$0x1] %vm370_vm8, %v842_v19 }
 0x261   : > { %872 = vst.msk [vmem:[%s1634_s1 + $0x1e] sm:$0x1] %vm370_vm8, %v843_v20 }
 0x262   : > { %873 = vst.msk [vmem:[%s1634_s1 + $0x26] sm:$0x1] %vm370_vm8, %v844_v21 }
 0x263   : > { %874 = vst.msk [vmem:[%s1634_s1 + $0x2e] sm:$0x1] %vm370_vm8, %v845_v22 }
 0x264   : > { %875 = vst.msk [vmem:[%s1634_s1 + $0x36] sm:$0x1] %vm370_vm8, %v846_v23  ;;  %v824_v25 = vpop.trf.xlu0 }
 0x265   : > { %876 = vst.msk [vmem:[%s1634_s1 + $0x3e] sm:$0x1] %vm370_vm8, %v847_v24  ;;  %v848_v26 = vrot.slane %v824_v25, 1  ;;  %v849_v27 = vrot.slane %v824_v25, 2  ;;  %v850_v28 = vrot.slane %v824_v25, 3  ;;  %v851_v29 = vrot.slane %v824_v25, 4 }
 0x266   : > { %877 = vst.msk [vmem:[%s1634_s1 + $0x46] sm:$0x1] %vm370_vm8, %v824_v25  ;;  %v852_v30 = vrot.slane %v824_v25, 5  ;;  %v853_v31 = vrot.slane %v824_v25, 6  ;;  %v854_v32 = vrot.slane %v824_v25, 7 }
 0x267   : > { %878 = vst.msk [vmem:[%s1634_s1 + $0x4e] sm:$0x1] %vm370_vm8, %v848_v26 }
 0x268   : > { %879 = vst.msk [vmem:[%s1634_s1 + $0x56] sm:$0x1] %vm370_vm8, %v849_v27 }
 0x269   : > { %880 = vst.msk [vmem:[%s1634_s1 + $0x5e] sm:$0x1] %vm370_vm8, %v850_v28 }
 0x26a   : > { %881 = vst.msk [vmem:[%s1634_s1 + $0x66] sm:$0x1] %vm370_vm8, %v851_v29 }
 0x26b   : > { %882 = vst.msk [vmem:[%s1634_s1 + $0x6e] sm:$0x1] %vm370_vm8, %v852_v30 }
 0x26c   : > { %883 = vst.msk [vmem:[%s1634_s1 + $0x76] sm:$0x1] %vm370_vm8, %v853_v31  ;;  %v906_v33 = vpop.trf.xlu0 }
 0x26d   : > { %884 = vst.msk [vmem:[%s1634_s1 + $0x7e] sm:$0x1] %vm370_vm8, %v854_v32  ;;  %v924_v34 = vrot.slane %v906_v33, 1  ;;  %v925_v35 = vrot.slane %v906_v33, 2  ;;  %v926_v36 = vrot.slane %v906_v33, 3  ;;  %v927_v37 = vrot.slane %v906_v33, 4 }
 0x26e   : > { %952 = vst.msk [vmem:[%s1634_s1 + $0x7] sm:$0x1] %vm370_vm8, %v906_v33  ;;  %v928_v38 = vrot.slane %v906_v33, 5  ;;  %v929_v39 = vrot.slane %v906_v33, 6  ;;  %v930_v40 = vrot.slane %v906_v33, 7 }
 0x26f   : > { %953 = vst.msk [vmem:[%s1634_s1 + $0xf] sm:$0x1] %vm370_vm8, %v924_v34 }
 0x270   : > { %954 = vst.msk [vmem:[%s1634_s1 + $0x17] sm:$0x1] %vm370_vm8, %v925_v35 }
 0x271   : > { %955 = vst.msk [vmem:[%s1634_s1 + $0x1f] sm:$0x1] %vm370_vm8, %v926_v36 }
 0x272   : > { %956 = vst.msk [vmem:[%s1634_s1 + $0x27] sm:$0x1] %vm370_vm8, %v927_v37 }
 0x273   : > { %957 = vst.msk [vmem:[%s1634_s1 + $0x2f] sm:$0x1] %vm370_vm8, %v928_v38 }
 0x274   : > { %958 = vst.msk [vmem:[%s1634_s1 + $0x37] sm:$0x1] %vm370_vm8, %v929_v39  ;;  %v907_v41 = vpop.trf.xlu0 }
 0x275   : > { %959 = vst.msk [vmem:[%s1634_s1 + $0x3f] sm:$0x1] %vm370_vm8, %v930_v40  ;;  %v931_v42 = vrot.slane %v907_v41, 1  ;;  %v932_v43 = vrot.slane %v907_v41, 2  ;;  %v933_v44 = vrot.slane %v907_v41, 3  ;;  %v934_v45 = vrot.slane %v907_v41, 4 }
 0x276   : > { %960 = vst.msk [vmem:[%s1634_s1 + $0x47] sm:$0x1] %vm370_vm8, %v907_v41  ;;  %v935_v46 = vrot.slane %v907_v41, 5  ;;  %v936_v47 = vrot.slane %v907_v41, 6  ;;  %v937_v48 = vrot.slane %v907_v41, 7  ;;  %v1039_v49 = vld [vmem:[%s1634_s1] sm:$0xff] (%p1578_p13) }
 0x277   : > { %961 = vst.msk [vmem:[%s1634_s1 + $0x4f] sm:$0x1] %vm370_vm8, %v931_v42  ;;  %v1041_v50 = vld [vmem:[%s1634_s1 + $0x8] sm:$0xff] (%p1578_p13)  ;;  %v1043_v51 = vld [vmem:[%s1634_s1 + $0x10] sm:$0xff] (%p1578_p13) }
 0x278   : > { %962 = vst.msk [vmem:[%s1634_s1 + $0x57] sm:$0x1] %vm370_vm8, %v932_v43  ;;  %v1045_v52 = vld [vmem:[%s1634_s1 + $0x18] sm:$0xff] (%p1578_p13) }
 0x279   : > { %963 = vst.msk [vmem:[%s1634_s1 + $0x5f] sm:$0x1] %vm370_vm8, %v933_v44  ;;  %974 = sbr.rel (!%p1578_p13) target bundleno = 654 (0x28e), region = 44  ;;  %v1047_v53 = vld [vmem:[%s1634_s1 + $0x20] sm:$0xff] (%p1578_p13) }
 0x27a   : > { %964 = vst.msk [vmem:[%s1634_s1 + $0x67] sm:$0x1] %vm370_vm8, %v934_v45  ;;  %v1049_v54 = vld [vmem:[%s1634_s1 + $0x28] sm:$0xff] (%p1578_p13) }
 0x27b   : > { %965 = vst.msk [vmem:[%s1634_s1 + $0x6f] sm:$0x1] %vm370_vm8, %v935_v46  ;;  %v1051_v55 = vld [vmem:[%s1634_s1 + $0x30] sm:$0xff] (%p1578_p13) }
 0x27c   : > { %966 = vst.msk [vmem:[%s1634_s1 + $0x77] sm:$0x1] %vm370_vm8, %v936_v47  ;;  %v1053_v56 = vld [vmem:[%s1634_s1 + $0x38] sm:$0xff] (%p1578_p13) }
 0x27d   : > { %967 = vst.msk [vmem:[%s1634_s1 + $0x7f] sm:$0x1] %vm370_vm8, %v937_v48  ;;  %v1055_v57 = vld [vmem:[%s1634_s1 + $0x40] sm:$0xff] (%p1578_p13) }
 0x27e   : > { %1040 = vst [vmem:[%s980_s9] sm:$0xff] %v1039_v49  ;;  %v1057_v58 = vld [vmem:[%s1634_s1 + $0x48] sm:$0xff] }
 0x27f   : > { %1042 = vst [vmem:[%s980_s9 + $0x10] sm:$0xff] %v1041_v50  ;;  %v1059_v59 = vld [vmem:[%s1634_s1 + $0x50] sm:$0xff] }
 0x280   : > { %1044 = vst [vmem:[%s980_s9 + $0x20] sm:$0xff] %v1043_v51  ;;  %v1061_v60 = vld [vmem:[%s1634_s1 + $0x58] sm:$0xff] }
 0x281   : > { %1046 = vst [vmem:[%s980_s9 + $0x30] sm:$0xff] %v1045_v52  ;;  %v1063_v61 = vld [vmem:[%s1634_s1 + $0x60] sm:$0xff] }
 0x282   : > { %1048 = vst [vmem:[%s980_s9 + $0x40] sm:$0xff] %v1047_v53  ;;  %v1065_v62 = vld [vmem:[%s1634_s1 + $0x68] sm:$0xff] }
 0x283   : > { %1050 = vst [vmem:[%s980_s9 + $0x50] sm:$0xff] %v1049_v54  ;;  %v1067_v63 = vld [vmem:[%s1634_s1 + $0x70] sm:$0xff] }
 0x284   : > { %1052 = vst [vmem:[%s980_s9 + $0x60] sm:$0xff] %v1051_v55  ;;  %v1069_v0 = vld [vmem:[%s1634_s1 + $0x78] sm:$0xff] }
 0x285   : > { %1054 = vst [vmem:[%s980_s9 + $0x70] sm:$0xff] %v1053_v56 }
 0x286   : > { %1056 = vst [vmem:[%s980_s9 + $0x80] sm:$0xff] %v1055_v57 }
 0x287   : > { %1058 = vst [vmem:[%s980_s9 + $0x90] sm:$0xff] %v1057_v58 }
 0x288   : > { %1060 = vst [vmem:[%s980_s9 + $0xa0] sm:$0xff] %v1059_v59 }
 0x289   : > { %1062 = vst [vmem:[%s980_s9 + $0xb0] sm:$0xff] %v1061_v60 }
 0x28a   : > { %1064 = vst [vmem:[%s980_s9 + $0xc0] sm:$0xff] %v1063_v61 }
 0x28b   : > { %1066 = vst [vmem:[%s980_s9 + $0xd0] sm:$0xff] %v1065_v62 }
 0x28c   : > { %1068 = vst [vmem:[%s980_s9 + $0xe0] sm:$0xff] %v1067_v63 }
 0x28d   : > { %1070 = vst [vmem:[%s980_s9 + $0xf0] sm:$0xff] %v1069_v0 }
 0x28e PF: > { %s17_s21 = sadd.s32 1, %s1457_s21   ;;  %s1991_s16 = sld [smem:[#allocation13_spill]] }
 0x28f   : > { %p14_p5 = scmp.ge.s32.totalorder %s17_s21, 14   ;;  %s1992_s10 = sld [smem:[#allocation14_spill]] }
 0x290   : > { %s1993_s19 = sld [smem:[#allocation16_spill]]  ;;  %s1994_s12 = smov %s1425_s13 }
 0x291   : > { %s1995_s13 = smov %s1429_s14  ;;  %s1996_s14 = smov %s1606_s15 }
 0x292   : > { %s1997_s15 = smov %s1445_s18  ;;  %s1998_s17 = smov %s1453_s20 }
 0x293   : > { %s2000_s20 = smov %s2010_s6  ;;  %16 = sbr.rel (!%p14_p5) target bundleno = 11 (0xb), region = 118 }
 0x295   : > { %s1999_s18 = smov %s1992_s10 }
 0x298   :  { %1086 = vsyncpa [#allocation4], 1 }
 0x299   :  { %1088 = vsyncpa [#allocation4 + $0x1], 1 }
 0x29a   :  { %1089 = vsyncpa [#allocation5], 1 }
 0x29b   :  { %1091 = vsyncpa [#allocation5 + $0x1], 1 }

</bundles_post_ra>
